<compile_context>
chip_gen: v5e
topology: v5e:2x2
jax: 0.10.0
libtpu: 0.0.40
codegen_flags: <defaults>
</compile_context>

<pallas_src>
import jax
import jax.numpy as jnp
from jax.experimental import pallas as pl
from jax.experimental.pallas import tpu as pltpu


def _round_up(v, m):
    return ((v + m - 1) // m) * m


def _vmem_capacity_bytes():
    try:
        return int(pltpu.get_tpu_info().vmem_capacity_bytes)
    except Exception:
        return 64 << 20  # conservative fallback = smallest per-TC VMEM (v7x)


def _two_tensorcores_per_chip():
    try:
        kind = jax.devices()[0].device_kind.lower()
    except Exception:
        return False
    # v4 / v5p megacore and v7x expose 2 TensorCores per chip.
    return any(tag in kind for tag in ("v4", "v5p", "v7", "7x"))


def mlp3_kernel(x_ref, w1_ref, b1_ref, w2_ref, b2_ref, w3_ref, b3_ref, o_ref):
    # Three chained GEMMs on the MXU: bf16 operands, f32 accumulation, f32 bias.
    a = jnp.dot(x_ref[...], w1_ref[...], preferred_element_type=jnp.float32)
    a = a + b1_ref[...]
    a = jnp.dot(a.astype(w2_ref.dtype), w2_ref[...],
                preferred_element_type=jnp.float32)
    a = a + b2_ref[...]
    a = jnp.dot(a.astype(w3_ref.dtype), w3_ref[...],
                preferred_element_type=jnp.float32)
    a = a + b3_ref[...]
    o_ref[...] = a.astype(o_ref.dtype)


def _build_call(B_pad, in_p, h1_p, h2_p, out_p, out_dtype, bm):
    # bf16 weights + f32 biases, all resident in VMEM across the whole grid.
    weight_bytes = (2 * (in_p * h1_p + h1_p * h2_p + h2_p * out_p)
                    + 4 * (h1_p + h2_p + out_p))

    # Single-buffer the grid-invariant weight/bias blocks only when double
    # buffering would cost real VMEM (and the API supports it). No fallback path.
    single_buffer = hasattr(pl, "Buffered") and weight_bytes > (4 << 20)
    wbuf = 1 if single_buffer else 2

    def const_spec(shape):
        idx = lambda i: (0,) * len(shape)
        if single_buffer:
            return pl.BlockSpec(shape, idx, pipeline_mode=pl.Buffered(1))
        return pl.BlockSpec(shape, idx)

    grid = (B_pad // bm,)

    # Roofline hint for the XLA scheduler.
    flops = 2 * B_pad * (in_p * h1_p + h1_p * h2_p + h2_p * out_p)
    bytes_accessed = 2 * B_pad * in_p + weight_bytes + 4 * B_pad * out_p
    cost = pl.CostEstimate(flops=flops, transcendentals=0,
                           bytes_accessed=bytes_accessed)

    # VMEM budget: double-buffered x/out tiles + resident weights + the fused
    # f32 intermediates (and their bf16 re-casts) living across the 3 matmuls.
    vmem_needed = (
        2 * bm * in_p * 2          # bf16 x tiles (double-buffered)
        + 2 * bm * out_p * 4       # f32 out tiles (double-buffered)
        + wbuf * weight_bytes      # resident weights + biases
        + 2 * bm * max(h1_p, h2_p) * 6   # f32 + bf16 intermediates
        + (2 << 20)                # headroom
    )
    capacity = _vmem_capacity_bytes()
    compiler_kwargs = dict(dimension_semantics=("parallel",))
    if vmem_needed > (32 << 20):
        compiler_kwargs["vmem_limit_bytes"] = min(vmem_needed,
                                                  int(0.85 * capacity))
    if vmem_needed > int(0.85 * capacity):
        # TODO(synk): for hidden sizes whose resident weights exceed ~85% of
        # VMEM (h ~> 4k bf16 on v7x), switch to a 2-D grid tiling the N dim of
        # w2/w3 (or emit_pipeline over K) instead of raising vmem_limit_bytes.
        pass

    return pl.pallas_call(
        mlp3_kernel,
        out_shape=jax.ShapeDtypeStruct((B_pad, out_p), out_dtype),
        grid_spec=pltpu.PrefetchScalarGridSpec(
            num_scalar_prefetch=0,
            grid=grid,
            in_specs=[
                pl.BlockSpec((bm, in_p), lambda i: (i, 0)),
                const_spec((in_p, h1_p)),
                const_spec((1, h1_p)),
                const_spec((h1_p, h2_p)),
                const_spec((1, h2_p)),
                const_spec((h2_p, out_p)),
                const_spec((1, out_p)),
            ],
            out_specs=pl.BlockSpec((bm, out_p), lambda i: (i, 0)),
        ),
        compiler_params=pltpu.CompilerParams(**compiler_kwargs),
        cost_estimate=cost,
    )


def simple_net_forward(x, params, *, bm=256):
    """simpleNet forward: three stacked nn.Linear layers (no activation),
    fused into one Pallas kernel.

    x: (B, in_dim) float32
    params: dict with w1 (in,h1), b1 (1,h1), w2 (h1,h2), b2 (1,h2),
            w3 (h2,out), b3 (1,out)   (weights pre-transposed vs. PyTorch)
    """
    B, in_dim = x.shape
    h1 = params["w1"].shape[1]
    h2 = params["w2"].shape[1]
    out_dim = params["w3"].shape[1]
    out_dtype = x.dtype

    # Lane-dense padding of every feature dim to a multiple of 128.
    # Zero-padded weights/biases are mathematically exact; output sliced back.
    in_p = _round_up(in_dim, 128)
    h1_p = _round_up(h1, 128)
    h2_p = _round_up(h2, 128)
    out_p = _round_up(out_dim, 128)

    # Batch tile: multiple of 16 (bf16 sublane packing), in [16, 512], no taller
    # than the (rounded-up) batch itself.
    bm = max(16, min(512, (bm // 16) * 16))
    bm = min(bm, _round_up(B, 16))

    two_tc = _two_tensorcores_per_chip()
    if two_tc:
        # Keep both TensorCores busy: >=2 and an even number of grid steps.
        if pl.cdiv(B, bm) < 2:
            bm = max(16, _round_up(pl.cdiv(B, 2), 16))
        B_pad = _round_up(B, 2 * bm)
    else:
        B_pad = _round_up(B, bm)

    def pad2(a, r, c):
        return jnp.pad(a, ((0, r - a.shape[0]), (0, c - a.shape[1])))

    # Cast once at the wrapper: x + weights -> bf16; biases stay f32.
    x_in = pad2(x, B_pad, in_p).astype(jnp.bfloat16)
    w1 = pad2(params["w1"], in_p, h1_p).astype(jnp.bfloat16)
    w2 = pad2(params["w2"], h1_p, h2_p).astype(jnp.bfloat16)
    w3 = pad2(params["w3"], h2_p, out_p).astype(jnp.bfloat16)
    b1 = pad2(params["b1"], 1, h1_p).astype(jnp.float32)
    b2 = pad2(params["b2"], 1, h2_p).astype(jnp.float32)
    b3 = pad2(params["b3"], 1, out_p).astype(jnp.float32)

    call = _build_call(B_pad, in_p, h1_p, h2_p, out_p, out_dtype, bm)
    out = call(x_in, w1, b1, w2, b2, w3, b3)
    return out[:B, :out_dim]


def init_params(key, in_dim, n_hidden_1, n_hidden_2, out_dim):
    """Deterministic init mimicking PyTorch nn.Linear default:
    U(-1/sqrt(fan_in), 1/sqrt(fan_in)) for both weight and bias."""
    keys = jax.random.split(key, 6)

    def linear(kw, kb, fan_in, fan_out):
        bound = 1.0 / jnp.sqrt(jnp.float32(fan_in))
        w = jax.random.uniform(kw, (fan_in, fan_out), jnp.float32, -bound, bound)
        b = jax.random.uniform(kb, (1, fan_out), jnp.float32, -bound, bound)
        return w, b

    w1, b1 = linear(keys[0], keys[1], in_dim, n_hidden_1)
    w2, b2 = linear(keys[2], keys[3], n_hidden_1, n_hidden_2)
    w3, b3 = linear(keys[4], keys[5], n_hidden_2, out_dim)
    return {"w1": w1, "b1": b1, "w2": w2, "b2": b2, "w3": w3, "b3": b3}


if __name__ == "__main__":
    # simpleNet-style (deliberately unaligned) dims: exercise the lane-padding
    # path for hidden/out dims and the batch-tail padding path.
    B, in_dim, n_hidden_1, n_hidden_2, out_dim = 200, 120, 160, 100, 10

    key = jax.random.PRNGKey(0)
    k_x, k_p = jax.random.split(key)
    x = jax.random.normal(k_x, (B, in_dim), dtype=jnp.float32)
    params = init_params(k_p, in_dim, n_hidden_1, n_hidden_2, out_dim)

    out = jax.block_until_ready(simple_net_forward(x, params))
    assert out.shape == (B, out_dim)

    # Mixed-precision reference matching the kernel exactly
    # (bf16 operands, f32 accumulation, f32 biases).
    def ref_mixed(x, p):
        a = jnp.dot(x.astype(jnp.bfloat16), p["w1"].astype(jnp.bfloat16),
                    preferred_element_type=jnp.float32) + p["b1"]
        a = jnp.dot(a.astype(jnp.bfloat16), p["w2"].astype(jnp.bfloat16),
                    preferred_element_type=jnp.float32) + p["b2"]
        a = jnp.dot(a.astype(jnp.bfloat16), p["w3"].astype(jnp.bfloat16),
                    preferred_element_type=jnp.float32) + p["b3"]
        return a

    ref = ref_mixed(x, params)
    assert jnp.allclose(out, ref, atol=1e-3, rtol=1e-3)

    # Loose sanity check vs. the full-f32 PyTorch-equivalent forward
    # (difference is only bf16 input/weight rounding).
    ref32 = x @ params["w1"] + params["b1"]
    ref32 = ref32 @ params["w2"] + params["b2"]
    ref32 = ref32 @ params["w3"] + params["b3"]
    assert jnp.allclose(out, ref32, atol=5e-2, rtol=5e-2)

    print("KERNEL_OK")
</pallas_src>

<mosaic_0001>
module attributes {stable_mosaic.version = 11 : i64} {
  func.func @mlp3_kernel(%arg0: i32, %arg1: memref<208x128xbf16, #tpu.memory_space<vmem>>, %arg2: memref<128x256xbf16, #tpu.memory_space<vmem>>, %arg3: memref<1x256xf32, #tpu.memory_space<vmem>>, %arg4: memref<256x128xbf16, #tpu.memory_space<vmem>>, %arg5: memref<1x128xf32, #tpu.memory_space<vmem>>, %arg6: memref<128x128xbf16, #tpu.memory_space<vmem>>, %arg7: memref<1x128xf32, #tpu.memory_space<vmem>>, %arg8: memref<208x128xf32, #tpu.memory_space<vmem>>) attributes {dimension_semantics = [#tpu.dimension_semantics<parallel>], iteration_bounds = array<i64: 1>, scalar_prefetch = 0 : i64, scratch_operands = 0 : i64, tpu.core_type = #tpu.core_type<tc>, window_params = [{transform_indices = @transform_0, window_bounds = array<i64: 208, 128>}, {pipeline_mode = #tpu.pipeline_mode<synchronous>, transform_indices = @transform_1, window_bounds = array<i64: 128, 256>}, {pipeline_mode = #tpu.pipeline_mode<synchronous>, transform_indices = @transform_2, window_bounds = array<i64: 1, 256>}, {pipeline_mode = #tpu.pipeline_mode<synchronous>, transform_indices = @transform_3, window_bounds = array<i64: 256, 128>}, {pipeline_mode = #tpu.pipeline_mode<synchronous>, transform_indices = @transform_4, window_bounds = array<i64: 1, 128>}, {pipeline_mode = #tpu.pipeline_mode<synchronous>, transform_indices = @transform_5, window_bounds = array<i64: 128, 128>}, {pipeline_mode = #tpu.pipeline_mode<synchronous>, transform_indices = @transform_6, window_bounds = array<i64: 1, 128>}, {transform_indices = @transform_7, window_bounds = array<i64: 208, 128>}]} {
    %c0 = arith.constant 0 : index
    %c0_0 = arith.constant 0 : index
    %0 = vector.load %arg1[%c0, %c0_0] : memref<208x128xbf16, #tpu.memory_space<vmem>>, vector<208x128xbf16>
    %c0_1 = arith.constant 0 : index
    %c0_2 = arith.constant 0 : index
    %1 = vector.load %arg2[%c0_1, %c0_2] : memref<128x256xbf16, #tpu.memory_space<vmem>>, vector<128x256xbf16>
    %cst = arith.constant dense<0.000000e+00> : vector<208x256xf32>
    %2 = tpu.matmul %0, %1, %cst {dimension_numbers = #tpu.dot_dimension_numbers<[1], [0], [0], [1], [0, 0, 1, 1], [], []>} : vector<208x128xbf16>, vector<128x256xbf16>, vector<208x256xf32> -> vector<208x256xf32>
    %c0_3 = arith.constant 0 : index
    %c0_4 = arith.constant 0 : index
    %3 = vector.load %arg3[%c0_3, %c0_4] : memref<1x256xf32, #tpu.memory_space<vmem>>, vector<1x256xf32>
    %4 = vector.broadcast %3 : vector<1x256xf32> to vector<208x256xf32>
    %5 = arith.addf %2, %4 : vector<208x256xf32>
    %6 = arith.truncf %5 : vector<208x256xf32> to vector<208x256xbf16>
    %c0_5 = arith.constant 0 : index
    %c0_6 = arith.constant 0 : index
    %7 = vector.load %arg4[%c0_5, %c0_6] : memref<256x128xbf16, #tpu.memory_space<vmem>>, vector<256x128xbf16>
    %cst_7 = arith.constant dense<0.000000e+00> : vector<208x128xf32>
    %8 = tpu.matmul %6, %7, %cst_7 {dimension_numbers = #tpu.dot_dimension_numbers<[1], [0], [0], [1], [0, 0, 1, 1], [], []>} : vector<208x256xbf16>, vector<256x128xbf16>, vector<208x128xf32> -> vector<208x128xf32>
    %c0_8 = arith.constant 0 : index
    %c0_9 = arith.constant 0 : index
    %9 = vector.load %arg5[%c0_8, %c0_9] : memref<1x128xf32, #tpu.memory_space<vmem>>, vector<1x128xf32>
    %10 = vector.broadcast %9 : vector<1x128xf32> to vector<208x128xf32>
    %11 = arith.addf %8, %10 : vector<208x128xf32>
    %12 = arith.truncf %11 : vector<208x128xf32> to vector<208x128xbf16>
    %c0_10 = arith.constant 0 : index
    %c0_11 = arith.constant 0 : index
    %13 = vector.load %arg6[%c0_10, %c0_11] : memref<128x128xbf16, #tpu.memory_space<vmem>>, vector<128x128xbf16>
    %cst_12 = arith.constant dense<0.000000e+00> : vector<208x128xf32>
    %14 = tpu.matmul %12, %13, %cst_12 {dimension_numbers = #tpu.dot_dimension_numbers<[1], [0], [0], [1], [0, 0, 1, 1], [], []>} : vector<208x128xbf16>, vector<128x128xbf16>, vector<208x128xf32> -> vector<208x128xf32>
    %c0_13 = arith.constant 0 : index
    %c0_14 = arith.constant 0 : index
    %15 = vector.load %arg7[%c0_13, %c0_14] : memref<1x128xf32, #tpu.memory_space<vmem>>, vector<1x128xf32>
    %16 = vector.broadcast %15 : vector<1x128xf32> to vector<208x128xf32>
    %17 = arith.addf %14, %16 : vector<208x128xf32>
    %c0_15 = arith.constant 0 : index
    %c0_16 = arith.constant 0 : index
    %18 = vector.load %arg8[%c0_15, %c0_16] : memref<208x128xf32, #tpu.memory_space<vmem>>, vector<208x128xf32>
    tpu.vector_store %arg8[%c0_15, %c0_16], %17 {strides = array<i32>} : memref<208x128xf32, #tpu.memory_space<vmem>>, vector<208x128xf32>,
    return
  }
  func.func @transform_0(%arg0: i32) -> (i32, i32) {
    %c0_i32 = arith.constant 0 : i32
    %c0_i32_0 = arith.constant 0 : i32
    return %arg0, %c0_i32 : i32, i32
  }
  func.func @transform_1(%arg0: i32) -> (i32, i32) {
    %c0_i32 = arith.constant 0 : i32
    %c0_i32_0 = arith.constant 0 : i32
    %c0_i32_1 = arith.constant 0 : i32
    return %c0_i32, %c0_i32_0 : i32, i32
  }
  func.func @transform_2(%arg0: i32) -> (i32, i32) {
    %c0_i32 = arith.constant 0 : i32
    %c0_i32_0 = arith.constant 0 : i32
    %c0_i32_1 = arith.constant 0 : i32
    return %c0_i32, %c0_i32_0 : i32, i32
  }
  func.func @transform_3(%arg0: i32) -> (i32, i32) {
    %c0_i32 = arith.constant 0 : i32
    %c0_i32_0 = arith.constant 0 : i32
    %c0_i32_1 = arith.constant 0 : i32
    return %c0_i32, %c0_i32_0 : i32, i32
  }
  func.func @transform_4(%arg0: i32) -> (i32, i32) {
    %c0_i32 = arith.constant 0 : i32
    %c0_i32_0 = arith.constant 0 : i32
    %c0_i32_1 = arith.constant 0 : i32
    return %c0_i32, %c0_i32_0 : i32, i32
  }
  func.func @transform_5(%arg0: i32) -> (i32, i32) {
    %c0_i32 = arith.constant 0 : i32
    %c0_i32_0 = arith.constant 0 : i32
    %c0_i32_1 = arith.constant 0 : i32
    return %c0_i32, %c0_i32_0 : i32, i32
  }
  func.func @transform_6(%arg0: i32) -> (i32, i32) {
    %c0_i32 = arith.constant 0 : i32
    %c0_i32_0 = arith.constant 0 : i32
    %c0_i32_1 = arith.constant 0 : i32
    return %c0_i32, %c0_i32_0 : i32, i32
  }
  func.func @transform_7(%arg0: i32) -> (i32, i32) {
    %c0_i32 = arith.constant 0 : i32
    %c0_i32_0 = arith.constant 0 : i32
    return %arg0, %c0_i32 : i32, i32
  }
}

</mosaic_0001>

<bundles_post_ra>
// kernel: tpu_custom_call.1
= control target key start
LH: loop header
LB: loop body
LE: loop exit
PB: predicated region body
PF: predicated region fallthrough
CT: control target
= control target key end

     0   :  { %12 = vsyncpa [#allocation3], 0  ;;  %s1653_s0 = inlined_call_operand.hbm [shape: bf16[208,128], index: 0, kind: input, shape index: {}]   ;;  %s1654_s1 = inlined_call_operand.hbm [shape: bf16[128,256], index: 1, kind: input, shape index: {}]   ;;  %s1655_s2 = inlined_call_operand.hbm [shape: f32[1,256], index: 2, kind: input, shape index: {}]   ;;  %s1656_s3 = inlined_call_operand.hbm [shape: bf16[256,128], index: 3, kind: input, shape index: {}]   ;;  %s1657_s4 = inlined_call_operand.vmem [shape: f32[1,128], index: 4, kind: input, shape index: {}]   ;;  %s1658_s5 = inlined_call_operand.hbm [shape: bf16[128,128], index: 5, kind: input, shape index: {}]   ;;  %s1659_s6 = inlined_call_operand.vmem [shape: f32[1,128], index: 6, kind: input, shape index: {}]   ;;  %s1660_s7 = inlined_call_operand.hbm [shape: f32[208,128], index: 7, kind: output, shape index: {}]  }
   0x1   :  { %13 = vsyncpa [#allocation6], 0 }
   0x2   :  { %14 = vsyncpa [#allocation9], 0  ;;  %s33_s26 = sshll.u32 %s1654_s1, 4  ;;  %s34_s26 = int_to_ptr.hbm [resolvable:$true] %s33_s26 }
   0x3   :  { %15 = vsyncpa [#allocation4], 0  ;;  %s1418_s27 = smov [#allocation5]   ;;  %s1419_s29 = smov 128  }
   0x4   :  { %s35_s28 = sshll.u32 %s1418_s27, 4  ;;  %s1420_s30 = smov 8   ;;  %s36_s28 = int_to_ptr.vmem [resolvable:$true] %s35_s28 }
   0x5   :  { %41 = dma.hbm_to_vmem [thread:$0]  %s34_s26, 2048, %s36_s28, [#allocation6], %s1419_s29, %s1419_s29, %s1420_s30  }
   0x6   :  { %s57_s10 = sshll.u32 %s1656_s3, 4  ;;  %s1421_s11 = smov [#allocation8]   ;;  %s58_s10 = int_to_ptr.hbm [resolvable:$true] %s57_s10 }
   0x7   :  { %s59_s12 = sshll.u32 %s1421_s11, 4  ;;  %s20_s14 = sshll.u32 %s1653_s0, 4  ;;  %s60_s12 = int_to_ptr.vmem [resolvable:$true] %s59_s12  ;;  %s21_s14 = int_to_ptr.hbm [resolvable:$true] %s20_s14 }
   0x8   :  { %s1422_s15 = smov 64   ;;  %s1423_s16 = smov 4  }
   0x9   :  { %65 = dma.hbm_to_vmem [thread:$0]  %s58_s10, 2048, %s60_s12, [#allocation9], %s1422_s15, %s1422_s15, %s1423_s16  }
   0xa   :  { %s47_s19 = sshll.u32 %s1655_s2, 4  ;;  %s1424_s20 = smov [#allocation2]   ;;  %s48_s19 = int_to_ptr.hbm [resolvable:$true] %s47_s19 }
   0xb   :  { %s22_s21 = sshll.u32 %s1424_s20, 4  ;;  %s1425_s3 = smov [#allocation7]   ;;  %s23_s21 = int_to_ptr.vmem [resolvable:$true] %s22_s21 }
   0xc   :  { %28 = dma.hbm_to_vmem [thread:$0]  %s21_s14, 1664, %s23_s21, [#allocation3], %s1422_s15, %s1422_s15, %s1423_s16  }
   0xd   :  { %s49_s22 = sshll.u32 %s1425_s3, 4  ;;  %s72_s0 = sshll.u32 %s1658_s5, 4  ;;  %s50_s22 = int_to_ptr.vmem [resolvable:$true] %s49_s22  ;;  %s73_s0 = int_to_ptr.hbm [resolvable:$true] %s72_s0 }
   0xe   :  { %52 = dma.hbm_to_vmem [thread:$0]  %s48_s19, 32, %s50_s22, [#allocation6]  }
   0xf   :  { %s1426_s25 = smov [#allocation10]  }
  0x10   :  { %s74_s26 = sshll.u32 %s1426_s25, 4  ;;  %s75_s26 = int_to_ptr.vmem [resolvable:$true] %s74_s26 }
  0x11   :  { %80 = dma.hbm_to_vmem [thread:$0]  %s73_s0, 1024, %s75_s26, [#allocation9], %s1422_s15, %s1422_s15, %s1423_s16  }
  0x12   :  { %1410 = dma.done.wait [#allocation3], 1664  }
  0x13   :  { %1411 = vsyncadd [#allocation3], 4294965632 }
  0x14   :  { %1412 = dma.done.wait [#allocation6], 2080  }
  0x15   :  { %1413 = vsyncadd [#allocation6], 4294965216 }
  0x16   :  { %1414 = dma.done.wait [#allocation9], 3072  }
  0x17   :  { %1415 = vsyncadd [#allocation9], 4294964224  ;;  %v1075_v0 = vld [vmem:[#allocation5 + $0x70] sm:$0xf]  ;;  %v1205_v1 = vld [vmem:[#allocation5 + $0x74] sm:$0xf0] }
  0x18   :  { %v1067_v2 = vld [vmem:[#allocation5 + $0x60] sm:$0xf]  ;;  %v1076_v3 = vor.u32 %v1205_v1, %v1075_v0  ;;  %v1203_v4 = vld [vmem:[#allocation5 + $0x64] sm:$0xf0]  ;;  %v1059_v6 = vld [vmem:[#allocation5 + $0x50] sm:$0xf] }
  0x19   :  { %v1068_v5 = vor.u32 %v1203_v4, %v1067_v2  ;;  %v1201_v7 = vld [vmem:[#allocation5 + $0x54] sm:$0xf0]  ;;  %v1051_v9 = vld [vmem:[#allocation5 + $0x40] sm:$0xf]  ;;  %v1199_v10 = vld [vmem:[#allocation5 + $0x44] sm:$0xf0] }
  0x1a   :  { %309 = vmatpush.bf16.msra.mxu0 %v1076_v3  ;;  %1230 = vmatpush.bf16.msra.mxu1 %v1076_v3  ;;  %v1060_v8 = vor.u32 %v1201_v7, %v1059_v6  ;;  %v1052_v11 = vor.u32 %v1199_v10, %v1051_v9  ;;  %v1043_v12 = vld [vmem:[#allocation5 + $0x30] sm:$0xf]  ;;  %v1197_v13 = vld [vmem:[#allocation5 + $0x34] sm:$0xf0]  ;;  %v1035_v15 = vld [vmem:[#allocation5 + $0x20] sm:$0xf] }
  0x1b   :  { %1231 = vmatpush.bf16.msra.mxu2 %v1076_v3  ;;  %1232 = vmatpush.bf16.msra.mxu3 %v1076_v3  ;;  %v1044_v14 = vor.u32 %v1197_v13, %v1043_v12  ;;  %v1195_v16 = vld [vmem:[#allocation5 + $0x24] sm:$0xf0]  ;;  %v1027_v18 = vld [vmem:[#allocation5 + $0x10] sm:$0xf]  ;;  %v1193_v19 = vld [vmem:[#allocation5 + $0x14] sm:$0xf0] }
  0x1c   :  { %v1036_v17 = vor.u32 %v1195_v16, %v1035_v15  ;;  %v1028_v20 = vor.u32 %v1193_v19, %v1027_v18  ;;  %v1019_v21 = vld [vmem:[#allocation5] sm:$0xf]  ;;  %v1191_v22 = vld [vmem:[#allocation5 + $0x4] sm:$0xf0]  ;;  %v1204_v23 = vld [vmem:[#allocation5 + $0x74] sm:$0xf] }
  0x1d   :  { %v1077_v24 = vld [vmem:[#allocation5 + $0x78] sm:$0xf0]  ;;  %v1020_v25 = vor.u32 %v1191_v22, %v1019_v21  ;;  %v1202_v27 = vld [vmem:[#allocation5 + $0x64] sm:$0xf]  ;;  %v1069_v28 = vld [vmem:[#allocation5 + $0x68] sm:$0xf0] }
  0x1e   :  { %310 = vmatpush.bf16.msra.mxu0 %v1068_v5  ;;  %1233 = vmatpush.bf16.msra.mxu1 %v1068_v5  ;;  %v1080_v26 = vor.u32 %v1204_v23, %v1077_v24  ;;  %v1177_v29 = vld [vmem:[#allocation2] sm:$0xff]  ;;  %v1072_v31 = vor.u32 %v1202_v27, %v1069_v28  ;;  %v1200_v32 = vld [vmem:[#allocation5 + $0x54] sm:$0xf]  ;;  %v1198_v35 = vld [vmem:[#allocation5 + $0x44] sm:$0xf]  ;;  %s950_s10 = sshll.u32 %s1660_s7, 4  ;;  %s951_s10 = int_to_ptr.hbm [resolvable:$true] %s950_s10 }
  0x1f   :  { %1234 = vmatpush.bf16.msra.mxu2 %v1068_v5  ;;  %1235 = vmatpush.bf16.msra.mxu3 %v1068_v5  ;;  %v1486_v30 = vld [vmem:[#allocation2 + $0x20] sm:$0xff]  ;;  %v1053_v36 = vld [vmem:[#allocation5 + $0x48] sm:$0xf0]  ;;  %v1196_v38 = vld [vmem:[#allocation5 + $0x34] sm:$0xf] }
  0x20   :  { %v1061_v33 = vld [vmem:[#allocation5 + $0x58] sm:$0xf0]  ;;  %v1056_v37 = vor.u32 %v1198_v35, %v1053_v36  ;;  %v1194_v41 = vld [vmem:[#allocation5 + $0x24] sm:$0xf]  ;;  %v1037_v42 = vld [vmem:[#allocation5 + $0x28] sm:$0xf0] }
  0x21   :  { %v1064_v34 = vor.u32 %v1200_v32, %v1061_v33  ;;  %v1045_v39 = vld [vmem:[#allocation5 + $0x38] sm:$0xf0]  ;;  %v1178_v43 = vld [vmem:[#allocation2 + $0x8] sm:$0xff]  ;;  %v1040_v45 = vor.u32 %v1194_v41, %v1037_v42  ;;  %v1192_v46 = vld [vmem:[#allocation5 + $0x14] sm:$0xf] }
  0x22   :  { %311 = vmatpush.bf16.msra.mxu0 %v1060_v8  ;;  %1236 = vmatpush.bf16.msra.mxu1 %v1060_v8  ;;  %v1048_v40 = vor.u32 %v1196_v38, %v1045_v39  ;;  %v1489_v44 = vld [vmem:[#allocation2 + $0x28] sm:$0xff]  ;;  %v1029_v47 = vld [vmem:[#allocation5 + $0x18] sm:$0xf0]  ;;  %v1021_v50 = vld [vmem:[#allocation5 + $0x8] sm:$0xf0] }
  0x23   :  { %1237 = vmatpush.bf16.msra.mxu2 %v1060_v8  ;;  %1238 = vmatpush.bf16.msra.mxu3 %v1060_v8  ;;  %v1032_v48 = vor.u32 %v1192_v46, %v1029_v47  ;;  %v1190_v49 = vld [vmem:[#allocation5 + $0x4] sm:$0xf]  ;;  %v1179_v52 = vld [vmem:[#allocation2 + $0x10] sm:$0xff]  ;;  %v1180_v54 = vld [vmem:[#allocation2 + $0x18] sm:$0xff] }
  0x24   :  { %v1024_v51 = vor.u32 %v1190_v49, %v1021_v50  ;;  %v1492_v53 = vld [vmem:[#allocation2 + $0x30] sm:$0xff]  ;;  %v1495_v55 = vld [vmem:[#allocation2 + $0x38] sm:$0xff]  ;;  %v1498_v56 = vld [vmem:[#allocation2 + $0x40] sm:$0xff] }
  0x25   :  { %v1213_v57 = vld [vmem:[#allocation8 + $0x38] sm:$0xff]  ;;  %v1212_v58 = vld [vmem:[#allocation8 + $0x30] sm:$0xff]  ;;  %v1211_v59 = vld [vmem:[#allocation8 + $0x28] sm:$0xff] }
  0x26   :  { %312 = vmatpush.bf16.msra.mxu0 %v1052_v11  ;;  %1239 = vmatpush.bf16.msra.mxu1 %v1052_v11  ;;  %v1501_v60 = vld [vmem:[#allocation2 + $0x48] sm:$0xff]  ;;  %v1208_v63 = vld [vmem:[#allocation8 + $0x10] sm:$0xff]  ;;  %v1207_v0 = vld [vmem:[#allocation8 + $0x8] sm:$0xff] }
  0x27   :  { %1240 = vmatpush.bf16.msra.mxu2 %v1052_v11  ;;  %1241 = vmatpush.bf16.msra.mxu3 %v1052_v11  ;;  %v1210_v61 = vld [vmem:[#allocation8 + $0x20] sm:$0xff]  ;;  %v1209_v62 = vld [vmem:[#allocation8 + $0x18] sm:$0xff]  ;;  %v1220_v7 = vld [vmem:[#allocation8 + $0x70] sm:$0xff] }
  0x28   :  { %v1206_v1 = vld [vmem:[#allocation8] sm:$0xff]  ;;  %v1221_v3 = vld [vmem:[#allocation8 + $0x78] sm:$0xff]  ;;  %v1510_v8 = vld [vmem:[#allocation2 + $0x58] sm:$0xff] }
  0x29   :  { %v1504_v2 = vld [vmem:[#allocation2 + $0x50] sm:$0xff]  ;;  %v1507_v6 = vld [vmem:[#allocation7] sm:$0x3]  ;;  %v1524_v22 = vld [vmem:[#allocation2 + $0x60] sm:$0xff] }
  0x2a   :  { %313 = vmatpush.bf16.msra.mxu0 %v1044_v14  ;;  %1242 = vmatpush.bf16.msra.mxu1 %v1044_v14  ;;  %v1513_v9 = vperm.slane %v1507_v6, 0  ;;  %v1219_v16 = vld [vmem:[#allocation8 + $0x68] sm:$0xff]  ;;  %v1218_v19 = vld [vmem:[#allocation8 + $0x60] sm:$0xff]  ;;  %v1217_v23 = vld [vmem:[#allocation8 + $0x58] sm:$0xff] }
  0x2b   :  { %1243 = vmatpush.bf16.msra.mxu2 %v1044_v14  ;;  %1244 = vmatpush.bf16.msra.mxu3 %v1044_v14  ;;  %v1215_v35 = vld [vmem:[#allocation8 + $0x48] sm:$0xff]  ;;  %v1214_v36 = vld [vmem:[#allocation8 + $0x40] sm:$0xff] }
  0x2e   :  { %314 = vmatpush.bf16.msra.mxu0 %v1036_v17  ;;  %1245 = vmatpush.bf16.msra.mxu1 %v1036_v17 }
  0x2f   :  { %1246 = vmatpush.bf16.msra.mxu2 %v1036_v17  ;;  %1247 = vmatpush.bf16.msra.mxu3 %v1036_v17 }
  0x32   :  { %315 = vmatpush.bf16.msra.mxu0 %v1028_v20  ;;  %1248 = vmatpush.bf16.msra.mxu1 %v1028_v20 }
  0x33   :  { %1249 = vmatpush.bf16.msra.mxu2 %v1028_v20  ;;  %1250 = vmatpush.bf16.msra.mxu3 %v1028_v20 }
  0x36   :  { %316 = vmatpush.bf16.msra.mxu0 %v1020_v25  ;;  %1251 = vmatpush.bf16.msra.mxu1 %v1020_v25 }
  0x37   :  { %1252 = vmatpush.bf16.msra.mxu2 %v1020_v25  ;;  %1253 = vmatpush.bf16.msra.mxu3 %v1020_v25 }
  0x39   :  { %317 = vmatmul.bf16.vlgmr.msra.gmra.mxu0 %v1177_v29  ;;  %337 = vmatmul.bf16.vlgmr.msra.gmra.mxu1 %v1486_v30 }
  0x3a   :  { %383 = vmatpush.bf16.msrb.mxu1 %v1080_v26  ;;  %357 = vmatmul.bf16.vlgmr.msra.gmra.mxu2 %v1498_v56 }
  0x3b   :  { %615 = vmatpush.bf16.msrb.mxu2 %v1213_v57  ;;  %367 = vmatmul.bf16.vlgmr.msra.gmra.mxu3 %v1504_v2 }
  0x3c   :  { %689 = vmatpush.bf16.msrb.mxu3 %v1221_v3 }
  0x3e   :  { %384 = vmatpush.bf16.msrb.mxu1 %v1072_v31 }
  0x3f   :  { %616 = vmatpush.bf16.msrb.mxu2 %v1212_v58  ;;  %v1543_v58 = vperm.slane %v1507_v6, 1 }
  0x40   :  { %690 = vmatpush.bf16.msrb.mxu3 %v1220_v7 }
  0x42   :  { %385 = vmatpush.bf16.msrb.mxu1 %v1064_v34 }
  0x43   :  { %617 = vmatpush.bf16.msrb.mxu2 %v1211_v59 }
  0x44   :  { %691 = vmatpush.bf16.msrb.mxu3 %v1219_v16 }
  0x46   :  { %386 = vmatpush.bf16.msrb.mxu1 %v1056_v37 }
  0x47   :  { %618 = vmatpush.bf16.msrb.mxu2 %v1210_v61 }
  0x48   :  { %692 = vmatpush.bf16.msrb.mxu3 %v1218_v19 }
  0x49   :  { %322 = vmatmul.bf16.gmra.mxu0 %v1178_v43  ;;  %342 = vmatmul.bf16.gmra.mxu1 %v1489_v44 }
  0x4a   :  { %387 = vmatpush.bf16.msrb.mxu1 %v1048_v40  ;;  %362 = vmatmul.bf16.gmra.mxu2 %v1501_v60 }
  0x4b   :  { %619 = vmatpush.bf16.msrb.mxu2 %v1209_v62  ;;  %372 = vmatmul.bf16.gmra.mxu3 %v1510_v8 }
  0x4c   :  { %693 = vmatpush.bf16.msrb.mxu3 %v1217_v23 }
  0x4e   :  { %388 = vmatpush.bf16.msrb.mxu1 %v1040_v45 }
  0x4f   :  { %620 = vmatpush.bf16.msrb.mxu2 %v1208_v63 }
  0x52   :  { %389 = vmatpush.bf16.msrb.mxu1 %v1032_v48 }
  0x53   :  { %621 = vmatpush.bf16.msrb.mxu2 %v1207_v0 }
  0x56   :  { %390 = vmatpush.bf16.msrb.mxu1 %v1024_v51 }
  0x57   :  { %622 = vmatpush.bf16.msrb.mxu2 %v1206_v1 }
  0x59   :  { %327 = vmatmul.bf16.gmra.mxu0 %v1179_v52  ;;  %347 = vmatmul.bf16.gmra.mxu1 %v1492_v53 }
  0x5b   :  { %377 = vmatmul.bf16.gmra.mxu3 %v1524_v22 }
  0x69   :  { %332 = vmatmul.bf16.gmra.mxu0 %v1180_v54  ;;  %352 = vmatmul.bf16.gmra.mxu1 %v1495_v55 }
  0x79   :  { %391 = vmatmul.bf16.vlgmr.msrb.gmra.mxu1 %v1177_v29 }
  0x89   :  { %396 = vmatmul.bf16.gmra.mxu1 %v1178_v43 }
  0x99   :  { %401 = vmatmul.bf16.gmra.mxu1 %v1179_v52 }
  0xa9   :  { %406 = vmatmul.bf16.gmra.mxu1 %v1180_v54 }
  0xb6   :  { %v318_v4 = vpop.f32.mrf.mxu0  ;;  %v338_v5 = vpop.f32.mrf.mxu1 }
  0xb7   :  { %v319_v10 = vadd.f32 %v318_v4, %v1513_v9  ;;  %v1518_v13 = vadd.f32 %v338_v5, %v1513_v9 }
  0xb9   :  { %411 = vmatmul.bf16.gmra.mxu1 %v1486_v30  ;;  %v1216_v30 = vld [vmem:[#allocation8 + $0x50] sm:$0xff] }
  0xba   :  { %694 = vmatpush.bf16.msrb.mxu3 %v1216_v30 }
  0xbe   :  { %v320_v11 = vpop.f32.mrf.mxu0  ;;  %v340_v12 = vpop.f32.mrf.mxu1  ;;  %695 = vmatpush.bf16.msrb.mxu3 %v1215_v35 }
  0xbf   :  { %v321_v14 = vadd.f32 %v320_v11, %v1513_v9  ;;  %v341_v15 = vadd.f32 %v340_v12, %v1513_v9  ;;  %v358_v11 = vpop.f32.mrf.mxu2  ;;  %v368_v30 = vpop.f32.mrf.mxu3 }
  0xc0   :  { %v359_v19 = vadd.f32 %v358_v11, %v1513_v9 }
  0xc1   :  { %v457_v17 = vpack.c.bf16 %v321_v14, %v319_v10  ;;  %v465_v18 = vpack.c.bf16 %v341_v15, %v1518_v13 }
  0xc2   :  { %696 = vmatpush.bf16.msrb.mxu3 %v1214_v36 }
  0xc3   :  { %623 = vmatmul.bf16.vlgmr.msrb.gmra.mxu2 %v457_v17 }
  0xc6   :  { %v323_v20 = vpop.f32.mrf.mxu0  ;;  %v343_v21 = vpop.f32.mrf.mxu1 }
  0xc7   :  { %v324_v24 = vadd.f32 %v323_v20, %v1513_v9  ;;  %v344_v27 = vadd.f32 %v343_v21, %v1513_v9  ;;  %v360_v16 = vpop.f32.mrf.mxu2 }
  0xc9   :  { %416 = vmatmul.bf16.gmra.mxu1 %v1489_v44 }
  0xce   :  { %v325_v25 = vpop.f32.mrf.mxu0  ;;  %v345_v26 = vpop.f32.mrf.mxu1 }
  0xcf   :  { %v326_v28 = vadd.f32 %v325_v25, %v1513_v9  ;;  %v346_v29 = vadd.f32 %v345_v26, %v1513_v9  ;;  %v363_v20 = vpop.f32.mrf.mxu2 }
  0xd1   :  { %v459_v31 = vpack.c.bf16 %v326_v28, %v324_v24  ;;  %v467_v32 = vpack.c.bf16 %v346_v29, %v344_v27  ;;  %v1227_v27 = vld [vmem:[#allocation10 + $0x28] sm:$0xff] }
  0xd3   :  { %628 = vmatmul.bf16.gmra.mxu2 %v459_v31  ;;  %v364_v31 = vadd.f32 %v363_v20, %v1513_v9 }
  0xd6   :  { %v328_v33 = vpop.f32.mrf.mxu0  ;;  %v348_v34 = vpop.f32.mrf.mxu1 }
  0xd7   :  { %v329_v37 = vadd.f32 %v328_v33, %v1513_v9  ;;  %v349_v40 = vadd.f32 %v348_v34, %v1513_v9  ;;  %v365_v29 = vpop.f32.mrf.mxu2 }
  0xd9   :  { %421 = vmatmul.bf16.gmra.mxu1 %v1492_v53 }
  0xde   :  { %v330_v38 = vpop.f32.mrf.mxu0  ;;  %v350_v39 = vpop.f32.mrf.mxu1 }
  0xdf   :  { %v331_v41 = vadd.f32 %v330_v38, %v1513_v9  ;;  %v351_v42 = vadd.f32 %v350_v39, %v1513_v9  ;;  %v370_v39 = vpop.f32.mrf.mxu3 }
  0xe1   :  { %v461_v43 = vpack.c.bf16 %v331_v41, %v329_v37  ;;  %v469_v44 = vpack.c.bf16 %v351_v42, %v349_v40  ;;  %v1225_v40 = vld [vmem:[#allocation10 + $0x18] sm:$0xff]  ;;  %v1224_v42 = vld [vmem:[#allocation10 + $0x10] sm:$0xff] }
  0xe3   :  { %633 = vmatmul.bf16.gmra.mxu2 %v461_v43 }
  0xe6   :  { %v333_v45 = vpop.f32.mrf.mxu0  ;;  %v353_v46 = vpop.f32.mrf.mxu1 }
  0xe7   :  { %v334_v47 = vadd.f32 %v333_v45, %v1513_v9  ;;  %v354_v50 = vadd.f32 %v353_v46, %v1513_v9  ;;  %v369_v45 = vadd.f32 %v368_v30, %v1513_v9  ;;  %v371_v46 = vadd.f32 %v370_v39, %v1513_v9 }
  0xe9   :  { %426 = vmatmul.bf16.gmra.mxu1 %v1495_v55 }
  0xee   :  { %v335_v48 = vpop.f32.mrf.mxu0  ;;  %v355_v49 = vpop.f32.mrf.mxu1 }
  0xef   :  { %v336_v51 = vadd.f32 %v335_v48, %v1513_v9  ;;  %v356_v52 = vadd.f32 %v355_v49, %v1513_v9 }
  0xf1   :  { %v463_v53 = vpack.c.bf16 %v336_v51, %v334_v47  ;;  %v471_v54 = vpack.c.bf16 %v356_v52, %v354_v50  ;;  %v477_v50 = vpack.c.bf16 %v371_v46, %v369_v45  ;;  %v1223_v52 = vld [vmem:[#allocation10 + $0x8] sm:$0xff] }
  0xf3   :  { %638 = vmatmul.bf16.gmra.mxu2 %v463_v53 }
  0xf6   :  { %v392_v57 = vpop.f32.mrf.mxu1 }
  0xf7   :  { %v393_v59 = vadd.f32 %v392_v57, %v1543_v58 }
  0xf9   :  { %431 = vmatmul.bf16.gmra.mxu1 %v1498_v56 }
  0xfe   :  { %v394_v55 = vpop.f32.mrf.mxu1 }
  0xff   :  { %v395_v61 = vadd.f32 %v394_v55, %v1543_v58  ;;  %v1222_v55 = vld [vmem:[#allocation10] sm:$0xff] }
 0x101   :  { %v458_v62 = vpack.c.bf16 %v395_v61, %v393_v59 }
 0x103   :  { %643 = vmatmul.bf16.gmra.mxu2 %v465_v18  ;;  %697 = vmatmul.bf16.vlgmr.msrb.gmra.mxu3 %v458_v62  ;;  %v1228_v18 = vld [vmem:[#allocation10 + $0x30] sm:$0xff] }
 0x106   :  { %v397_v63 = vpop.f32.mrf.mxu1 }
 0x107   :  { %v398_v1 = vadd.f32 %v397_v63, %v1543_v58 }
 0x109   :  { %436 = vmatmul.bf16.gmra.mxu1 %v1501_v60 }
 0x10e   :  { %v399_v0 = vpop.f32.mrf.mxu1 }
 0x10f   :  { %v400_v3 = vadd.f32 %v399_v0, %v1543_v58 }
 0x111   :  { %v460_v56 = vpack.c.bf16 %v400_v3, %v398_v1 }
 0x113   :  { %648 = vmatmul.bf16.gmra.mxu2 %v467_v32  ;;  %702 = vmatmul.bf16.gmra.mxu3 %v460_v56  ;;  %v366_v32 = vadd.f32 %v365_v29, %v1513_v9 }
 0x115   :  { %v475_v36 = vpack.c.bf16 %v366_v32, %v364_v31 }
 0x116   :  { %v402_v4 = vpop.f32.mrf.mxu1 }
 0x117   :  { %v403_v6 = vadd.f32 %v402_v4, %v1543_v58 }
 0x119   :  { %441 = vmatmul.bf16.gmra.mxu1 %v1504_v2  ;;  %v1229_v2 = vld [vmem:[#allocation10 + $0x38] sm:$0xff] }
 0x11a   :  { %844 = vmatpush.bf16.msrb.mxu0 %v1229_v2 }
 0x11e   :  { %v404_v5 = vpop.f32.mrf.mxu1  ;;  %845 = vmatpush.bf16.msrb.mxu0 %v1228_v18  ;;  %v1580_v18 = vld [vmem:[%s1657_s4] ss:$0 sm:$0xff] }
 0x11f   :  { %v405_v7 = vadd.f32 %v404_v5, %v1543_v58 }
 0x121   :  { %v462_v10 = vpack.c.bf16 %v405_v7, %v403_v6 }
 0x122   :  { %846 = vmatpush.bf16.msrb.mxu0 %v1227_v27 }
 0x123   :  { %653 = vmatmul.bf16.gmra.mxu2 %v469_v44  ;;  %707 = vmatmul.bf16.gmra.mxu3 %v462_v10  ;;  %v373_v44 = vpop.f32.mrf.mxu3 }
 0x124   :  { %v374_v59 = vadd.f32 %v373_v44, %v1513_v9 }
 0x126   :  { %v407_v60 = vpop.f32.mrf.mxu1 }
 0x127   :  { %v408_v13 = vadd.f32 %v407_v60, %v1543_v58 }
 0x129   :  { %446 = vmatmul.bf16.gmra.mxu1 %v1510_v8  ;;  %v361_v8 = vadd.f32 %v360_v16, %v1513_v9 }
 0x12b   :  { %v473_v25 = vpack.c.bf16 %v361_v8, %v359_v19 }
 0x12e   :  { %v409_v12 = vpop.f32.mrf.mxu1 }
 0x12f   :  { %v410_v14 = vadd.f32 %v409_v12, %v1543_v58 }
 0x131   :  { %v464_v15 = vpack.c.bf16 %v410_v14, %v408_v13 }
 0x133   :  { %658 = vmatmul.bf16.gmra.mxu2 %v471_v54  ;;  %712 = vmatmul.bf16.gmra.mxu3 %v464_v15  ;;  %v375_v54 = vpop.f32.mrf.mxu3 }
 0x134   :  { %v376_v61 = vadd.f32 %v375_v54, %v1513_v9 }
 0x136   :  { %v412_v17 = vpop.f32.mrf.mxu1  ;;  %v479_v56 = vpack.c.bf16 %v376_v61, %v374_v59 }
 0x137   :  { %v413_v23 = vadd.f32 %v412_v17, %v1543_v58 }
 0x139   :  { %451 = vmatmul.bf16.gmra.mxu1 %v1524_v22  ;;  %v1226_v22 = vld [vmem:[#allocation10 + $0x20] sm:$0xff] }
 0x13a   :  { %847 = vmatpush.bf16.msrb.mxu0 %v1226_v22 }
 0x13b   :  { %v378_v3 = vpop.f32.mrf.mxu3 }
 0x13c   :  { %v379_v10 = vadd.f32 %v378_v3, %v1513_v9 }
 0x13e   :  { %v414_v21 = vpop.f32.mrf.mxu1  ;;  %848 = vmatpush.bf16.msrb.mxu0 %v1225_v40 }
 0x13f   :  { %v415_v24 = vadd.f32 %v414_v21, %v1543_v58 }
 0x141   :  { %v466_v26 = vpack.c.bf16 %v415_v24, %v413_v23 }
 0x142   :  { %849 = vmatpush.bf16.msrb.mxu0 %v1224_v42 }
 0x143   :  { %663 = vmatmul.bf16.gmra.mxu2 %v473_v25  ;;  %717 = vmatmul.bf16.gmra.mxu3 %v466_v26  ;;  %v380_v7 = vpop.f32.mrf.mxu3 }
 0x144   :  { %v381_v60 = vadd.f32 %v380_v7, %v1513_v9 }
 0x146   :  { %v417_v28 = vpop.f32.mrf.mxu1  ;;  %v624_v37 = vpop.f32.mrf.mxu2  ;;  %850 = vmatpush.bf16.msrb.mxu0 %v1223_v52  ;;  %v481_v14 = vpack.c.bf16 %v381_v60, %v379_v10 }
 0x147   :  { %v418_v34 = vadd.f32 %v417_v28, %v1543_v58  ;;  %v625_v9 = vadd.f32 %v1580_v18, %v624_v37 }
 0x14a   :  { %851 = vmatpush.bf16.msrb.mxu0 %v1222_v55 }
 0x14e   :  { %v419_v33 = vpop.f32.mrf.mxu1  ;;  %v626_v43 = vpop.f32.mrf.mxu2 }
 0x14f   :  { %v420_v35 = vadd.f32 %v419_v33, %v1543_v58  ;;  %v627_v8 = vadd.f32 %v1580_v18, %v626_v43 }
 0x151   :  { %v468_v38 = vpack.c.bf16 %v420_v35, %v418_v34 }
 0x153   :  { %668 = vmatmul.bf16.gmra.mxu2 %v475_v36  ;;  %722 = vmatmul.bf16.gmra.mxu3 %v468_v38 }
 0x156   :  { %v422_v41 = vpop.f32.mrf.mxu1  ;;  %v629_v53 = vpop.f32.mrf.mxu2 }
 0x157   :  { %v423_v48 = vadd.f32 %v422_v41, %v1543_v58  ;;  %v630_v31 = vadd.f32 %v1580_v18, %v629_v53 }
 0x15e   :  { %v424_v47 = vpop.f32.mrf.mxu1  ;;  %v631_v63 = vpop.f32.mrf.mxu2 }
 0x15f   :  { %v425_v49 = vadd.f32 %v424_v47, %v1543_v58  ;;  %v632_v32 = vadd.f32 %v1580_v18, %v631_v63 }
 0x161   :  { %v470_v51 = vpack.c.bf16 %v425_v49, %v423_v48 }
 0x163   :  { %673 = vmatmul.bf16.gmra.mxu2 %v477_v50  ;;  %727 = vmatmul.bf16.gmra.mxu3 %v470_v51 }
 0x166   :  { %v427_v57 = vpop.f32.mrf.mxu1  ;;  %v634_v6 = vpop.f32.mrf.mxu2 }
 0x167   :  { %v428_v0 = vadd.f32 %v427_v57, %v1543_v58  ;;  %v635_v45 = vadd.f32 %v1580_v18, %v634_v6 }
 0x16e   :  { %v429_v62 = vpop.f32.mrf.mxu1  ;;  %v636_v16 = vpop.f32.mrf.mxu2 }
 0x16f   :  { %v430_v1 = vadd.f32 %v429_v62, %v1543_v58  ;;  %v637_v46 = vadd.f32 %v1580_v18, %v636_v16 }
 0x171   :  { %v472_v4 = vpack.c.bf16 %v430_v1, %v428_v0 }
 0x173   :  { %678 = vmatmul.bf16.gmra.mxu2 %v479_v56  ;;  %732 = vmatmul.bf16.gmra.mxu3 %v472_v4 }
 0x176   :  { %v432_v5 = vpop.f32.mrf.mxu1  ;;  %v639_v19 = vpop.f32.mrf.mxu2 }
 0x177   :  { %v433_v12 = vadd.f32 %v432_v5, %v1543_v58  ;;  %v640_v61 = vadd.f32 %v1580_v18, %v639_v19 }
 0x17e   :  { %v434_v11 = vpop.f32.mrf.mxu1  ;;  %v641_v22 = vpop.f32.mrf.mxu2 }
 0x17f   :  { %v435_v13 = vadd.f32 %v434_v11, %v1543_v58  ;;  %v642_v62 = vadd.f32 %v1580_v18, %v641_v22 }
 0x181   :  { %v474_v15 = vpack.c.bf16 %v435_v13, %v433_v12 }
 0x183   :  { %683 = vmatmul.bf16.gmra.mxu2 %v481_v14  ;;  %737 = vmatmul.bf16.gmra.mxu3 %v474_v15 }
 0x186   :  { %v437_v2 = vpop.f32.mrf.mxu1  ;;  %v698_v17 = vpop.f32.mrf.mxu3 }
 0x187   :  { %v438_v21 = vadd.f32 %v437_v2, %v1543_v58  ;;  %v699_v25 = vadd.f32 %v698_v17, %v625_v9  ;;  %v644_v39 = vpop.f32.mrf.mxu2 }
 0x188   :  { %v645_v11 = vadd.f32 %v1580_v18, %v644_v39 }
 0x18e   :  { %v439_v20 = vpop.f32.mrf.mxu1  ;;  %v700_v24 = vpop.f32.mrf.mxu3 }
 0x18f   :  { %v440_v23 = vadd.f32 %v439_v20, %v1543_v58  ;;  %v701_v26 = vadd.f32 %v700_v24, %v627_v8  ;;  %v646_v44 = vpop.f32.mrf.mxu2 }
 0x190   :  { %v647_v12 = vadd.f32 %v1580_v18, %v646_v44  ;;  %v1611_v44 = vld [vmem:[%s1659_s6] ss:$0 sm:$0xff]  ;;  %s1427_s6 = smov [#allocation11]  }
 0x191   :  { %v476_v27 = vpack.c.bf16 %v440_v23, %v438_v21  ;;  %v763_v28 = vpack.c.bf16 %v701_v26, %v699_v25  ;;  %s948_s28 = sshll.u32 %s1427_s6, 4  ;;  %s949_s28 = int_to_ptr.vmem [resolvable:$true] %s948_s28 }
 0x193   :  { %742 = vmatmul.bf16.gmra.mxu3 %v476_v27  ;;  %852 = vmatmul.bf16.vlgmr.msrb.gmra.mxu0 %v763_v28 }
 0x196   :  { %v442_v29 = vpop.f32.mrf.mxu1  ;;  %v703_v30 = vpop.f32.mrf.mxu3 }
 0x197   :  { %v443_v34 = vadd.f32 %v442_v29, %v1543_v58  ;;  %v704_v37 = vadd.f32 %v703_v30, %v630_v31  ;;  %v649_v57 = vpop.f32.mrf.mxu2 }
 0x198   :  { %v650_v19 = vadd.f32 %v1580_v18, %v649_v57 }
 0x19e   :  { %v444_v33 = vpop.f32.mrf.mxu1  ;;  %v705_v36 = vpop.f32.mrf.mxu3 }
 0x19f   :  { %v445_v35 = vadd.f32 %v444_v33, %v1543_v58  ;;  %v706_v38 = vadd.f32 %v705_v36, %v632_v32  ;;  %v651_v0 = vpop.f32.mrf.mxu2 }
 0x1a0   :  { %v652_v9 = vadd.f32 %v1580_v18, %v651_v0 }
 0x1a1   :  { %v478_v40 = vpack.c.bf16 %v445_v35, %v443_v34  ;;  %v764_v41 = vpack.c.bf16 %v706_v38, %v704_v37 }
 0x1a3   :  { %747 = vmatmul.bf16.gmra.mxu3 %v478_v40  ;;  %857 = vmatmul.bf16.gmra.mxu0 %v764_v41 }
 0x1a6   :  { %v447_v42 = vpop.f32.mrf.mxu1  ;;  %v708_v43 = vpop.f32.mrf.mxu3 }
 0x1a7   :  { %v448_v48 = vadd.f32 %v447_v42, %v1543_v58  ;;  %v709_v51 = vadd.f32 %v708_v43, %v635_v45  ;;  %v654_v60 = vpop.f32.mrf.mxu2 }
 0x1a8   :  { %v655_v26 = vadd.f32 %v1580_v18, %v654_v60 }
 0x1ae   :  { %v449_v47 = vpop.f32.mrf.mxu1  ;;  %v710_v50 = vpop.f32.mrf.mxu3 }
 0x1af   :  { %v450_v49 = vadd.f32 %v449_v47, %v1543_v58  ;;  %v711_v52 = vadd.f32 %v710_v50, %v637_v46  ;;  %v656_v2 = vpop.f32.mrf.mxu2 }
 0x1b0   :  { %v657_v27 = vadd.f32 %v1580_v18, %v656_v2 }
 0x1b1   :  { %v480_v53 = vpack.c.bf16 %v450_v49, %v448_v48  ;;  %v765_v54 = vpack.c.bf16 %v711_v52, %v709_v51 }
 0x1b3   :  { %752 = vmatmul.bf16.gmra.mxu3 %v480_v53  ;;  %862 = vmatmul.bf16.gmra.mxu0 %v765_v54 }
 0x1b6   :  { %v452_v55 = vpop.f32.mrf.mxu1  ;;  %v713_v59 = vpop.f32.mrf.mxu3 }
 0x1b7   :  { %v453_v1 = vadd.f32 %v452_v55, %v1543_v58  ;;  %v714_v4 = vadd.f32 %v713_v59, %v640_v61  ;;  %v659_v17 = vpop.f32.mrf.mxu2 }
 0x1b8   :  { %v660_v34 = vadd.f32 %v1580_v18, %v659_v17 }
 0x1be   :  { %v454_v63 = vpop.f32.mrf.mxu1  ;;  %v715_v56 = vpop.f32.mrf.mxu3 }
 0x1bf   :  { %v455_v3 = vadd.f32 %v454_v63, %v1543_v58  ;;  %v716_v5 = vadd.f32 %v715_v56, %v642_v62  ;;  %v661_v24 = vpop.f32.mrf.mxu2 }
 0x1c0   :  { %v662_v35 = vadd.f32 %v1580_v18, %v661_v24 }
 0x1c1   :  { %v482_v6 = vpack.c.bf16 %v455_v3, %v453_v1  ;;  %v766_v7 = vpack.c.bf16 %v716_v5, %v714_v4 }
 0x1c3   :  { %757 = vmatmul.bf16.gmra.mxu3 %v482_v6  ;;  %867 = vmatmul.bf16.gmra.mxu0 %v766_v7 }
 0x1c6   :  { %v718_v10 = vpop.f32.mrf.mxu3 }
 0x1c7   :  { %v719_v14 = vadd.f32 %v718_v10, %v645_v11  ;;  %v664_v30 = vpop.f32.mrf.mxu2 }
 0x1c8   :  { %v665_v42 = vadd.f32 %v1580_v18, %v664_v30 }
 0x1ce   :  { %v720_v13 = vpop.f32.mrf.mxu3 }
 0x1cf   :  { %v721_v15 = vadd.f32 %v720_v13, %v647_v12  ;;  %v666_v33 = vpop.f32.mrf.mxu2 }
 0x1d0   :  { %v667_v43 = vadd.f32 %v1580_v18, %v666_v33 }
 0x1d1   :  { %v767_v16 = vpack.c.bf16 %v721_v15, %v719_v14 }
 0x1d3   :  { %872 = vmatmul.bf16.gmra.mxu0 %v767_v16 }
 0x1d6   :  { %v723_v58 = vpop.f32.mrf.mxu3 }
 0x1d7   :  { %v724_v20 = vadd.f32 %v723_v58, %v650_v19  ;;  %v669_v40 = vpop.f32.mrf.mxu2 }
 0x1d8   :  { %v670_v55 = vadd.f32 %v1580_v18, %v669_v40 }
 0x1de   :  { %v725_v8 = vpop.f32.mrf.mxu3 }
 0x1df   :  { %v726_v21 = vadd.f32 %v725_v8, %v652_v9  ;;  %v671_v45 = vpop.f32.mrf.mxu2 }
 0x1e0   :  { %v672_v59 = vadd.f32 %v1580_v18, %v671_v45 }
 0x1e1   :  { %v768_v23 = vpack.c.bf16 %v726_v21, %v724_v20 }
 0x1e3   :  { %877 = vmatmul.bf16.gmra.mxu0 %v768_v23 }
 0x1e6   :  { %v728_v25 = vpop.f32.mrf.mxu3 }
 0x1e7   :  { %v729_v29 = vadd.f32 %v728_v25, %v655_v26  ;;  %v674_v53 = vpop.f32.mrf.mxu2 }
 0x1e8   :  { %v675_v10 = vadd.f32 %v1580_v18, %v674_v53 }
 0x1ee   :  { %v730_v28 = vpop.f32.mrf.mxu3 }
 0x1ef   :  { %v731_v22 = vadd.f32 %v730_v28, %v657_v27  ;;  %v676_v56 = vpop.f32.mrf.mxu2 }
 0x1f0   :  { %v677_v60 = vadd.f32 %v1580_v18, %v676_v56 }
 0x1f1   :  { %v769_v31 = vpack.c.bf16 %v731_v22, %v729_v29 }
 0x1f3   :  { %882 = vmatmul.bf16.gmra.mxu0 %v769_v31 }
 0x1f6   :  { %v733_v32 = vpop.f32.mrf.mxu3 }
 0x1f7   :  { %v734_v37 = vadd.f32 %v733_v32, %v660_v34  ;;  %v679_v7 = vpop.f32.mrf.mxu2 }
 0x1f8   :  { %v680_v9 = vadd.f32 %v1580_v18, %v679_v7 }
 0x1fe   :  { %v735_v36 = vpop.f32.mrf.mxu3 }
 0x1ff   :  { %v736_v38 = vadd.f32 %v735_v36, %v662_v35  ;;  %v681_v2 = vpop.f32.mrf.mxu2 }
 0x200   :  { %v682_v8 = vadd.f32 %v1580_v18, %v681_v2 }
 0x201   :  { %v770_v39 = vpack.c.bf16 %v736_v38, %v734_v37 }
 0x203   :  { %887 = vmatmul.bf16.gmra.mxu0 %v770_v39 }
 0x206   :  { %v738_v41 = vpop.f32.mrf.mxu3 }
 0x207   :  { %v739_v47 = vadd.f32 %v738_v41, %v665_v42  ;;  %v684_v24 = vpop.f32.mrf.mxu2 }
 0x208   :  { %v685_v31 = vadd.f32 %v1580_v18, %v684_v24 }
 0x20e   :  { %v740_v46 = vpop.f32.mrf.mxu3 }
 0x20f   :  { %v741_v48 = vadd.f32 %v740_v46, %v667_v43  ;;  %v686_v30 = vpop.f32.mrf.mxu2 }
 0x210   :  { %v853_v49 = vpop.f32.mrf.mxu0  ;;  %v687_v32 = vadd.f32 %v1580_v18, %v686_v30 }
 0x211   :  { %v771_v50 = vpack.c.bf16 %v741_v48, %v739_v47  ;;  %v854_v51 = vadd.f32 %v1611_v44, %v853_v49 }
 0x213   :  { %918 = vst [vmem:[#allocation11] sm:$0xff] %v854_v51  ;;  %892 = vmatmul.bf16.gmra.mxu0 %v771_v50 }
 0x216   :  { %v743_v52 = vpop.f32.mrf.mxu3 }
 0x217   :  { %v744_v62 = vadd.f32 %v743_v52, %v670_v55 }
 0x218   :  { %v855_v54 = vpop.f32.mrf.mxu0 }
 0x219   :  { %v856_v57 = vadd.f32 %v1611_v44, %v855_v54 }
 0x21b   :  { %919 = vst [vmem:[#allocation11 + $0x8] sm:$0xff] %v856_v57 }
 0x21e   :  { %v745_v61 = vpop.f32.mrf.mxu3 }
 0x21f   :  { %v746_v63 = vadd.f32 %v745_v61, %v672_v59 }
 0x220   :  { %v858_v0 = vpop.f32.mrf.mxu0 }
 0x221   :  { %v772_v1 = vpack.c.bf16 %v746_v63, %v744_v62  ;;  %v859_v3 = vadd.f32 %v1611_v44, %v858_v0 }
 0x223   :  { %920 = vst [vmem:[#allocation11 + $0x10] sm:$0xff] %v859_v3  ;;  %897 = vmatmul.bf16.gmra.mxu0 %v772_v1 }
 0x226   :  { %v748_v4 = vpop.f32.mrf.mxu3 }
 0x227   :  { %v749_v12 = vadd.f32 %v748_v4, %v675_v10 }
 0x228   :  { %v860_v5 = vpop.f32.mrf.mxu0 }
 0x229   :  { %v861_v6 = vadd.f32 %v1611_v44, %v860_v5 }
 0x22b   :  { %921 = vst [vmem:[#allocation11 + $0x18] sm:$0xff] %v861_v6 }
 0x22e   :  { %v750_v11 = vpop.f32.mrf.mxu3 }
 0x22f   :  { %v751_v13 = vadd.f32 %v750_v11, %v677_v60 }
 0x230   :  { %v863_v14 = vpop.f32.mrf.mxu0 }
 0x231   :  { %v773_v15 = vpack.c.bf16 %v751_v13, %v749_v12  ;;  %v864_v16 = vadd.f32 %v1611_v44, %v863_v14 }
 0x233   :  { %922 = vst [vmem:[#allocation11 + $0x20] sm:$0xff] %v864_v16  ;;  %902 = vmatmul.bf16.gmra.mxu0 %v773_v15 }
 0x236   :  { %v753_v58 = vpop.f32.mrf.mxu3 }
 0x237   :  { %v754_v21 = vadd.f32 %v753_v58, %v680_v9 }
 0x238   :  { %v865_v17 = vpop.f32.mrf.mxu0 }
 0x239   :  { %v866_v19 = vadd.f32 %v1611_v44, %v865_v17 }
 0x23b   :  { %923 = vst [vmem:[#allocation11 + $0x28] sm:$0xff] %v866_v19 }
 0x23e   :  { %v755_v20 = vpop.f32.mrf.mxu3 }
 0x23f   :  { %v756_v23 = vadd.f32 %v755_v20, %v682_v8 }
 0x240   :  { %v868_v25 = vpop.f32.mrf.mxu0 }
 0x241   :  { %v774_v26 = vpack.c.bf16 %v756_v23, %v754_v21  ;;  %v869_v27 = vadd.f32 %v1611_v44, %v868_v25 }
 0x243   :  { %924 = vst [vmem:[#allocation11 + $0x30] sm:$0xff] %v869_v27  ;;  %907 = vmatmul.bf16.gmra.mxu0 %v774_v26 }
 0x246   :  { %v758_v28 = vpop.f32.mrf.mxu3 }
 0x247   :  { %v759_v34 = vadd.f32 %v758_v28, %v685_v31 }
 0x248   :  { %v870_v29 = vpop.f32.mrf.mxu0 }
 0x249   :  { %v871_v22 = vadd.f32 %v1611_v44, %v870_v29 }
 0x24b   :  { %925 = vst [vmem:[#allocation11 + $0x38] sm:$0xff] %v871_v22 }
 0x24e   :  { %v760_v33 = vpop.f32.mrf.mxu3 }
 0x24f   :  { %v761_v35 = vadd.f32 %v760_v33, %v687_v32 }
 0x250   :  { %v873_v36 = vpop.f32.mrf.mxu0 }
 0x251   :  { %v775_v37 = vpack.c.bf16 %v761_v35, %v759_v34  ;;  %v874_v38 = vadd.f32 %v1611_v44, %v873_v36 }
 0x253   :  { %926 = vst [vmem:[#allocation11 + $0x40] sm:$0xff] %v874_v38  ;;  %912 = vmatmul.bf16.gmra.mxu0 %v775_v37 }
 0x258   :  { %v875_v39 = vpop.f32.mrf.mxu0 }
 0x259   :  { %v876_v40 = vadd.f32 %v1611_v44, %v875_v39 }
 0x25b   :  { %927 = vst [vmem:[#allocation11 + $0x48] sm:$0xff] %v876_v40 }
 0x260   :  { %v878_v41 = vpop.f32.mrf.mxu0 }
 0x261   :  { %v879_v42 = vadd.f32 %v1611_v44, %v878_v41 }
 0x263   :  { %928 = vst [vmem:[#allocation11 + $0x50] sm:$0xff] %v879_v42 }
 0x268   :  { %v880_v43 = vpop.f32.mrf.mxu0 }
 0x269   :  { %v881_v18 = vadd.f32 %v1611_v44, %v880_v43 }
 0x26b   :  { %929 = vst [vmem:[#allocation11 + $0x58] sm:$0xff] %v881_v18 }
 0x270   :  { %v883_v45 = vpop.f32.mrf.mxu0 }
 0x271   :  { %v884_v46 = vadd.f32 %v1611_v44, %v883_v45 }
 0x273   :  { %930 = vst [vmem:[#allocation11 + $0x60] sm:$0xff] %v884_v46 }
 0x278   :  { %v885_v47 = vpop.f32.mrf.mxu0 }
 0x279   :  { %v886_v48 = vadd.f32 %v1611_v44, %v885_v47 }
 0x27b   :  { %931 = vst [vmem:[#allocation11 + $0x68] sm:$0xff] %v886_v48 }
 0x280   :  { %v888_v49 = vpop.f32.mrf.mxu0 }
 0x281   :  { %v889_v50 = vadd.f32 %v1611_v44, %v888_v49 }
 0x283   :  { %932 = vst [vmem:[#allocation11 + $0x70] sm:$0xff] %v889_v50 }
 0x288   :  { %v890_v51 = vpop.f32.mrf.mxu0 }
 0x289   :  { %v891_v52 = vadd.f32 %v1611_v44, %v890_v51 }
 0x28b   :  { %933 = vst [vmem:[#allocation11 + $0x78] sm:$0xff] %v891_v52 }
 0x290   :  { %v893_v53 = vpop.f32.mrf.mxu0 }
 0x291   :  { %v894_v54 = vadd.f32 %v1611_v44, %v893_v53 }
 0x293   :  { %934 = vst [vmem:[#allocation11 + $0x80] sm:$0xff] %v894_v54 }
 0x298   :  { %v895_v57 = vpop.f32.mrf.mxu0 }
 0x299   :  { %v896_v55 = vadd.f32 %v1611_v44, %v895_v57 }
 0x29b   :  { %935 = vst [vmem:[#allocation11 + $0x88] sm:$0xff] %v896_v55 }
 0x2a0   :  { %v898_v59 = vpop.f32.mrf.mxu0 }
 0x2a1   :  { %v899_v61 = vadd.f32 %v1611_v44, %v898_v59 }
 0x2a3   :  { %936 = vst [vmem:[#allocation11 + $0x90] sm:$0xff] %v899_v61 }
 0x2a8   :  { %v900_v62 = vpop.f32.mrf.mxu0 }
 0x2a9   :  { %v901_v63 = vadd.f32 %v1611_v44, %v900_v62 }
 0x2ab   :  { %937 = vst [vmem:[#allocation11 + $0x98] sm:$0xff] %v901_v63 }
 0x2b0   :  { %v903_v0 = vpop.f32.mrf.mxu0 }
 0x2b1   :  { %v904_v1 = vadd.f32 %v1611_v44, %v903_v0 }
 0x2b3   :  { %938 = vst [vmem:[#allocation11 + $0xa0] sm:$0xff] %v904_v1 }
 0x2b8   :  { %v905_v3 = vpop.f32.mrf.mxu0 }
 0x2b9   :  { %v906_v56 = vadd.f32 %v1611_v44, %v905_v3 }
 0x2bb   :  { %939 = vst [vmem:[#allocation11 + $0xa8] sm:$0xff] %v906_v56 }
 0x2c0   :  { %v908_v4 = vpop.f32.mrf.mxu0 }
 0x2c1   :  { %v909_v5 = vadd.f32 %v1611_v44, %v908_v4 }
 0x2c3   :  { %940 = vst [vmem:[#allocation11 + $0xb0] sm:$0xff] %v909_v5 }
 0x2c8   :  { %v910_v6 = vpop.f32.mrf.mxu0 }
 0x2c9   :  { %v911_v7 = vadd.f32 %v1611_v44, %v910_v6 }
 0x2cb   :  { %941 = vst [vmem:[#allocation11 + $0xb8] sm:$0xff] %v911_v7 }
 0x2d0   :  { %v913_v10 = vpop.f32.mrf.mxu0 }
 0x2d1   :  { %v914_v60 = vadd.f32 %v1611_v44, %v913_v10 }
 0x2d3   :  { %942 = vst [vmem:[#allocation11 + $0xc0] sm:$0xff] %v914_v60 }
 0x2d8   :  { %v915_v11 = vpop.f32.mrf.mxu0 }
 0x2d9   :  { %v916_v12 = vadd.f32 %v1611_v44, %v915_v11 }
 0x2db   :  { %943 = vst [vmem:[#allocation11 + $0xc8] sm:$0xff] %v916_v12 }
 0x2dc   :  { %956 = dma.vmem_to_hbm [thread:$0]  %s949_s28, 3328, %s951_s10, [#allocation4], %s1419_s29, %s1419_s29, %s1420_s30  }
 0x2dd   :  { %1416 = dma.done.wait [#allocation4], 3328  }
 0x2de   :  { %1417 = vsyncadd [#allocation4], 4294963968 }
 0x2df   :  { %961 = vsyncpa [#allocation3], 1 }
 0x2e0   :  { %962 = vsyncpa [#allocation6], 1 }
 0x2e1   :  { %963 = vsyncpa [#allocation9], 1 }
 0x2e2   :  { %964 = vsyncpa [#allocation4], 1 }

</bundles_post_ra>
